<compile_context>
chip_gen: v7x
topology: tpu7x:2x2x1
jax: 0.10.0
libtpu: 0.0.40
codegen_flags: <defaults>
</compile_context>

<pallas_src>
import functools

import jax
import jax.numpy as jnp
from jax import lax
from jax.experimental import pallas as pl
from jax.experimental.pallas import tpu as pltpu

_MIB = 1024 * 1024


def _contrastive_kernel(
    x_ref,        # (tile_m, D) row tile of x (padded rows are zero)
    y_ref,        # (Np, D) full (padded) y, resident
    out_ref,      # (1, 1) loss
    colsum_ref,   # VMEM (1, Np) running column exp-sum (shifted by gmax)
    gmax_ref,     # VMEM (1, 1)  running global max of sim
    sumdiag_ref,  # SMEM (1,)    sum_i sim_ii
    sumrlse_ref,  # SMEM (1,)    sum_i row_lse_i
    sumcos_ref,   # SMEM (1,)    sum_i cos_i
    *,
    inv_temperature,
    cos_simi_scale,
    eps,
    n_valid,
    n_padded,
    tile_m,
    mxu_precision,
):
    i = pl.program_id(0)
    nsteps = pl.num_programs(0)
    needs_mask = n_padded != n_valid   # trace-time constant

    @pl.when(i == 0)
    def _init():
        colsum_ref[...] = jnp.zeros_like(colsum_ref)
        gmax_ref[...] = jnp.full(gmax_ref.shape, -jnp.inf, dtype=gmax_ref.dtype)
        sumdiag_ref[0] = jnp.float32(0.0)
        sumrlse_ref[0] = jnp.float32(0.0)
        sumcos_ref[0] = jnp.float32(0.0)

    # Fold 1/T into the (tile_m, D) operand instead of the (tile_m, Np) slab.
    x_in = x_ref[...]
    x_scaled = x_in * inv_temperature

    # (tile_m, Np) similarity slab: NT contraction straight on the MXU, f32 acc.
    sim = lax.dot_general(
        x_scaled,
        y_ref[...],
        dimension_numbers=(((1,), (1,)), ((), ())),
        preferred_element_type=jnp.float32,
        precision=mxu_precision,
    )

    start = pl.multiple_of(i * tile_m, tile_m)

    if needs_mask:
        col_ids = lax.broadcasted_iota(jnp.int32, (tile_m, n_padded), 1)
        sim = jnp.where(col_ids < n_valid, sim, -1e30)
        row_ids = start + lax.broadcasted_iota(jnp.int32, (tile_m, 1), 0)
        row_valid_b = row_ids < n_valid          # (tile_m, 1) bool
        row_valid = row_valid_b.astype(jnp.float32)

    # Row log-sum-exp: rows are complete (all columns in the slab) -> exact LSE,
    # and this is the ONLY (tile_m, Np) exp pass.
    m_r = jnp.max(sim, axis=1, keepdims=True)              # (tile_m, 1)
    p = jnp.exp(sim - m_r)                                  # (tile_m, Np)
    row_lse = jnp.log(jnp.sum(p, axis=1, keepdims=True)) + m_r

    # Diagonal + cosine reuse the same per-row sum(x*y): diag(x @ y.T) == sum(x*y,-1).
    xf = x_in.astype(jnp.float32)
    yf = y_ref[pl.ds(start, tile_m), :].astype(jnp.float32)
    dot_xy = jnp.sum(xf * yf, axis=1, keepdims=True)        # (tile_m, 1)
    diag = dot_xy * inv_temperature
    x_nrm = jnp.sqrt(jnp.sum(xf * xf, axis=1, keepdims=True))
    y_nrm = jnp.sqrt(jnp.sum(yf * yf, axis=1, keepdims=True))
    cos = dot_xy / jnp.maximum(x_nrm * y_nrm, eps)

    # Column exp-sum accumulator (flash-style running scalar max).
    if needs_mask:
        m_r_eff = jnp.where(row_valid_b, m_r, -jnp.inf)      # padded rows -> -inf
    else:
        m_r_eff = m_r
    tile_gmax = jnp.max(m_r_eff)
    old_gmax = gmax_ref[...]                                 # (1, 1)
    new_gmax = jnp.maximum(old_gmax, tile_gmax)
    rescale = jnp.exp(old_gmax - new_gmax)                   # (1,1) vector exp; 0 on step 0
    w = jnp.exp(m_r_eff - new_gmax)                          # (tile_m,1); 0 on padded rows
    colsum_ref[...] = colsum_ref[...] * rescale + jnp.sum(p * w, axis=0, keepdims=True)
    gmax_ref[...] = new_gmax

    if needs_mask:
        sumdiag_ref[0] += jnp.sum(diag * row_valid)
        sumrlse_ref[0] += jnp.sum(row_lse * row_valid)
        sumcos_ref[0] += jnp.sum(cos * row_valid)
    else:
        sumdiag_ref[0] += jnp.sum(diag)
        sumrlse_ref[0] += jnp.sum(row_lse)
        sumcos_ref[0] += jnp.sum(cos)

    @pl.when(i == nsteps - 1)
    def _finalize():
        inv_n = 1.0 / float(n_valid)
        col_lse = jnp.log(colsum_ref[...]) + gmax_ref[...]   # (1, Np)
        if needs_mask:
            cids = lax.broadcasted_iota(jnp.int32, (1, n_padded), 1)
            col_lse = jnp.where(cids < n_valid, col_lse, 0.0)
        sum_col_lse = jnp.sum(col_lse)
        sum_diag = sumdiag_ref[0]
        i2t = -(sum_diag - sumrlse_ref[0]) * inv_n
        t2i = -(sum_diag - sum_col_lse) * inv_n
        loss = (i2t + t2i) * 0.5
        loss = loss + (1.0 - sumcos_ref[0] * inv_n) * cos_simi_scale
        out_ref[...] = jnp.full((1, 1), loss, dtype=jnp.float32)


def _round_up(v, m):
    return ((v + m - 1) // m) * m


def _tpu_budget_and_tile_cap():
    """Generation-aware scoped-VMEM budget and row-tile cap."""
    try:
        vmem_cap = int(pltpu.get_tpu_info().vmem_capacity_bytes)
    except Exception:
        vmem_cap = 64 * _MIB              # conservative (v7x-sized) if query fails
    if vmem_cap >= 100 * _MIB:            # v5e / v6e: 128 MiB physical VMEM
        return 100 * _MIB, 512
    return 48 * _MIB, 256                 # v7x: 64 MiB physical per TensorCore


def _vmem_estimate(tile_m, n_pad, d, itemsize):
    return (
        2 * tile_m * d * itemsize         # x row tile, double-buffered
        + n_pad * d * itemsize            # y resident, single-buffered
        + 3 * tile_m * n_pad * 4          # f32 sim + exp slab + headroom
        + 6 * n_pad * 4                   # column accumulator + slack
        + 1 * _MIB                        # misc scratch slack
    )


def contrastive_loss(x, y, temperature=0.2, cos_simi_scale=1.0, matmul_dtype=None):
    """Pallas implementation of ContrastiveLoss.forward. Returns (loss, loss).

    matmul_dtype: optionally cast x/y at the kernel boundary (e.g. jnp.bfloat16)
    to feed the MXU at full rate and halve resident-y VMEM. Default keeps dtype.
    """
    n, d = x.shape
    assert y.shape == (n, d), (x.shape, y.shape)
    assert x.dtype == y.dtype, (x.dtype, y.dtype)

    if matmul_dtype is not None:
        x = x.astype(matmul_dtype)
        y = y.astype(matmul_dtype)

    itemsize = jnp.dtype(x.dtype).itemsize
    budget, tile_cap = _tpu_budget_and_tile_cap()

    # Largest row tile (multiple of 8, <= generation cap) whose resident-y + slab
    # estimate fits the budget; shrink the tile rather than clamping the VMEM
    # limit below the real requirement.
    tile_m = min(tile_cap, _round_up(n, 8))
    while True:
        n_pad = _round_up(n, tile_m)
        est = _vmem_estimate(tile_m, n_pad, d, itemsize)
        if est <= budget or tile_m <= 8:
            break
        tile_m = max(8, _round_up(tile_m // 2, 8))

    if n_pad != n:
        pad = n_pad - n
        x_p = jnp.pad(x, ((0, pad), (0, 0)))
        y_p = jnp.pad(y, ((0, pad), (0, 0)))
    else:
        x_p, y_p = x, y

    mxu_precision = (
        lax.Precision.HIGHEST if x_p.dtype == jnp.float32 else lax.Precision.DEFAULT
    )

    kernel = functools.partial(
        _contrastive_kernel,
        inv_temperature=1.0 / float(temperature),
        cos_simi_scale=float(cos_simi_scale),
        eps=1e-6,
        n_valid=n,
        n_padded=n_pad,
        tile_m=tile_m,
        mxu_precision=mxu_precision,
    )

    # Never clamp below the estimate; otherwise stay inside the generation budget.
    vmem_limit = int(max(min(max(2 * est, 32 * _MIB), budget), est))

    def _build(y_spec):
        return pl.pallas_call(
            kernel,
            out_shape=jax.ShapeDtypeStruct((1, 1), jnp.float32),
            grid_spec=pltpu.PrefetchScalarGridSpec(
                num_scalar_prefetch=0,
                grid=(n_pad // tile_m,),
                in_specs=[
                    pl.BlockSpec((tile_m, d), lambda i: (i, 0)),   # x row tile
                    y_spec,                                        # y, resident
                ],
                out_specs=pl.BlockSpec((1, 1), lambda i: (0, 0)),
                scratch_shapes=[
                    pltpu.VMEM((1, n_pad), jnp.float32),  # column exp-sum
                    pltpu.VMEM((1, 1), jnp.float32),      # running global max
                    pltpu.SMEM((1,), jnp.float32),        # sum diag
                    pltpu.SMEM((1,), jnp.float32),        # sum row lse
                    pltpu.SMEM((1,), jnp.float32),        # sum cos
                ],
            ),
            compiler_params=pltpu.CompilerParams(
                # Carried column accumulator => row axis is a reduction.
                dimension_semantics=("arbitrary",),
                vmem_limit_bytes=vmem_limit,
            ),
        )

    try:
        # y's block index is constant across the grid: single-buffer it so the
        # largest VMEM consumer is not duplicated by the pipeline.
        y_spec = pl.BlockSpec((n_pad, d), lambda i: (0, 0),
                              pipeline_mode=pl.Buffered(1))
        out = _build(y_spec)(x_p, y_p)
    except Exception:
        # Fallback: default (double-buffered) y for jax versions without
        # pipeline_mode / single-buffering support.
        y_spec = pl.BlockSpec((n_pad, d), lambda i: (0, 0))
        out = _build(y_spec)(x_p, y_p)

    loss = out[0, 0]
    return (loss, loss)


def _reference(x, y, temperature=0.2, cos_simi_scale=1.0):
    """Pure-JAX reference matching the PyTorch semantics."""
    xf = x.astype(jnp.float32)
    yf = y.astype(jnp.float32)
    sim = jnp.matmul(xf, yf.T, precision=lax.Precision.HIGHEST) / temperature
    lsm_rows = jax.nn.log_softmax(sim, axis=1)
    lsm_cols = jax.nn.log_softmax(sim.T, axis=1)
    i2t = -jnp.mean(jnp.diag(lsm_rows))
    t2i = -jnp.mean(jnp.diag(lsm_cols))
    loss = (i2t + t2i) / 2
    cos = jnp.sum(xf * yf, axis=1) / jnp.maximum(
        jnp.linalg.norm(xf, axis=1) * jnp.linalg.norm(yf, axis=1), 1e-6
    )
    return loss + (1.0 - jnp.mean(cos)) * cos_simi_scale


if __name__ == "__main__":
    key = jax.random.PRNGKey(0)
    kx, ky = jax.random.split(key)

    # Small shapes consistent with (N, D) embedding inputs.
    N, D = 8, 32
    x = jax.random.normal(kx, (N, D), dtype=jnp.float32)
    y = jax.random.normal(ky, (N, D), dtype=jnp.float32)

    loss, loss2 = contrastive_loss(x, y, temperature=0.2, cos_simi_scale=1.0)
    jax.block_until_ready(loss)
    ref = _reference(x, y, temperature=0.2, cos_simi_scale=1.0)
    assert jnp.allclose(loss, ref, atol=1e-3, rtol=1e-3), (loss, ref)
    assert jnp.allclose(loss, loss2)

    # Ragged N (exercises the zero-pad + mask path).
    N2 = 12
    x2 = jax.random.normal(kx, (N2, D), dtype=jnp.float32)
    y2 = jax.random.normal(ky, (N2, D), dtype=jnp.float32)
    loss_r, _ = contrastive_loss(x2, y2, temperature=0.2, cos_simi_scale=1.0)
    jax.block_until_ready(loss_r)
    ref_r = _reference(x2, y2, temperature=0.2, cos_simi_scale=1.0)
    assert jnp.allclose(loss_r, ref_r, atol=1e-3, rtol=1e-3), (loss_r, ref_r)

    # bf16 boundary cast (full-rate MXU path); looser tolerance vs f32 reference.
    loss_bf, _ = contrastive_loss(x, y, temperature=0.2, cos_simi_scale=1.0,
                                  matmul_dtype=jnp.bfloat16)
    jax.block_until_ready(loss_bf)
    assert jnp.allclose(loss_bf, ref, atol=5e-2, rtol=5e-2), (loss_bf, ref)

    print("KERNEL_OK")
</pallas_src>

<mosaic_0001>
module attributes {stable_mosaic.version = 11 : i64} {
  func.func @_contrastive_kernel(%arg0: i32, %arg1: memref<8x32xf32, #tpu.memory_space<vmem>>, %arg2: memref<8x32xf32, #tpu.memory_space<vmem>>, %arg3: memref<1x1xf32, #tpu.memory_space<vmem>>, %arg4: memref<1x8xf32, #tpu.memory_space<vmem>>, %arg5: memref<1x1xf32, #tpu.memory_space<vmem>>, %arg6: memref<1xf32, #tpu.memory_space<smem>>, %arg7: memref<1xf32, #tpu.memory_space<smem>>, %arg8: memref<1xf32, #tpu.memory_space<smem>>) attributes {dimension_semantics = [#tpu.dimension_semantics<arbitrary>], iteration_bounds = array<i64: 1>, scalar_prefetch = 0 : i64, scratch_operands = 5 : i64, tpu.core_type = #tpu.core_type<tc>, window_params = [{transform_indices = @transform_0, window_bounds = array<i64: 8, 32>}, {pipeline_mode = #tpu.pipeline_mode<synchronous>, transform_indices = @transform_1, window_bounds = array<i64: 8, 32>}, {pipeline_mode = #tpu.pipeline_mode<synchronous>, transform_indices = @transform_2, window_bounds = array<i64: 1, 1>}]} {
    %c0_i32 = arith.constant 0 : i32
    %0 = arith.cmpi eq, %arg0, %c0_i32 : i32
    %1 = arith.extui %0 : i1 to i32
    %c0_i32_0 = arith.constant 0 : i32
    %2 = arith.cmpi ne, %1, %c0_i32_0 : i32
    scf.if %2 {
      %cst_34 = arith.constant 0.000000e+00 : f32
      %84 = vector.broadcast %cst_34 : f32 to vector<1x8xf32>
      %c0_35 = arith.constant 0 : index
      %c0_36 = arith.constant 0 : index
      %85 = vector.load %arg4[%c0_35, %c0_36] : memref<1x8xf32, #tpu.memory_space<vmem>>, vector<1x8xf32>
      tpu.vector_store %arg4[%c0_35, %c0_36], %84 {strides = array<i32>} : memref<1x8xf32, #tpu.memory_space<vmem>>, vector<1x8xf32>,
      %cst_37 = arith.constant 0xFF800000 : f32
      %86 = vector.broadcast %cst_37 : f32 to vector<1x1xf32>
      %c0_38 = arith.constant 0 : index
      %c0_39 = arith.constant 0 : index
      %87 = vector.load %arg5[%c0_38, %c0_39] : memref<1x1xf32, #tpu.memory_space<vmem>>, vector<1x1xf32>
      tpu.vector_store %arg5[%c0_38, %c0_39], %86 {strides = array<i32>} : memref<1x1xf32, #tpu.memory_space<vmem>>, vector<1x1xf32>,
      %cst_40 = arith.constant 0.000000e+00 : f32
      %c0_41 = arith.constant 0 : index
      %88 = memref.load %arg6[%c0_41] : memref<1xf32, #tpu.memory_space<smem>>
      memref.store %cst_40, %arg6[%c0_41] : memref<1xf32, #tpu.memory_space<smem>>
      %cst_42 = arith.constant 0.000000e+00 : f32
      %c0_43 = arith.constant 0 : index
      %89 = memref.load %arg7[%c0_43] : memref<1xf32, #tpu.memory_space<smem>>
      memref.store %cst_42, %arg7[%c0_43] : memref<1xf32, #tpu.memory_space<smem>>
      %cst_44 = arith.constant 0.000000e+00 : f32
      %c0_45 = arith.constant 0 : index
      %90 = memref.load %arg8[%c0_45] : memref<1xf32, #tpu.memory_space<smem>>
      memref.store %cst_44, %arg8[%c0_45] : memref<1xf32, #tpu.memory_space<smem>>
    } else {
    }
    %c0 = arith.constant 0 : index
    %c0_1 = arith.constant 0 : index
    %3 = vector.load %arg1[%c0, %c0_1] : memref<8x32xf32, #tpu.memory_space<vmem>>, vector<8x32xf32>
    %cst = arith.constant 5.000000e+00 : f32
    %4 = vector.broadcast %cst : f32 to vector<8x32xf32>
    %5 = arith.mulf %3, %4 : vector<8x32xf32>
    %c0_2 = arith.constant 0 : index
    %c0_3 = arith.constant 0 : index
    %6 = vector.load %arg2[%c0_2, %c0_3] : memref<8x32xf32, #tpu.memory_space<vmem>>, vector<8x32xf32>
    %cst_4 = arith.constant dense<0.000000e+00> : vector<8x8xf32>
    %7 = tpu.matmul %5, %6, %cst_4 {dimension_numbers = #tpu.dot_dimension_numbers<[1], [1], [0], [0], [0, 0, 1, 0], [], []>, precision = #tpu.contract_precision<fp32>} : vector<8x32xf32>, vector<8x32xf32>, vector<8x8xf32> -> vector<8x8xf32>
    %c8_i32 = arith.constant 8 : i32
    %8 = arith.muli %arg0, %c8_i32 : i32
    %9 = tpu.assume_multiple %8, 8 : i32
    %cst_5 = arith.constant dense<0xFF800000> : vector<8xf32>
    %10 = vector.multi_reduction <maximumf>, %7, %cst_5 [1] : vector<8x8xf32> to vector<8xf32>
    %11 = vector.shape_cast %10 : vector<8xf32> to vector<8x1xf32>
    %12 = vector.broadcast %11 : vector<8x1xf32> to vector<8x8xf32>
    %13 = arith.subf %7, %12 : vector<8x8xf32>
    %14 = math.exp %13 : vector<8x8xf32>
    %cst_6 = arith.constant dense<0.000000e+00> : vector<8xf32>
    %15 = vector.multi_reduction <add>, %14, %cst_6 [1] : vector<8x8xf32> to vector<8xf32>
    %16 = vector.shape_cast %15 : vector<8xf32> to vector<8x1xf32>
    %17 = math.log %16 : vector<8x1xf32>
    %18 = arith.addf %17, %11 : vector<8x1xf32>
    %19 = arith.index_cast %9 : i32 to index
    %c0_7 = arith.constant 0 : index
    %20 = vector.load %arg2[%19, %c0_7] : memref<8x32xf32, #tpu.memory_space<vmem>>, vector<8x32xf32>
    %21 = arith.mulf %3, %20 : vector<8x32xf32>
    %cst_8 = arith.constant dense<0.000000e+00> : vector<8xf32>
    %22 = vector.multi_reduction <add>, %21, %cst_8 [1] : vector<8x32xf32> to vector<8xf32>
    %23 = vector.shape_cast %22 : vector<8xf32> to vector<8x1xf32>
    %cst_9 = arith.constant 5.000000e+00 : f32
    %24 = vector.broadcast %cst_9 : f32 to vector<8x1xf32>
    %25 = arith.mulf %23, %24 : vector<8x1xf32>
    %26 = arith.mulf %3, %3 : vector<8x32xf32>
    %cst_10 = arith.constant dense<0.000000e+00> : vector<8xf32>
    %27 = vector.multi_reduction <add>, %26, %cst_10 [1] : vector<8x32xf32> to vector<8xf32>
    %28 = vector.shape_cast %27 : vector<8xf32> to vector<8x1xf32>
    %29 = math.sqrt %28 : vector<8x1xf32>
    %30 = arith.mulf %20, %20 : vector<8x32xf32>
    %cst_11 = arith.constant dense<0.000000e+00> : vector<8xf32>
    %31 = vector.multi_reduction <add>, %30, %cst_11 [1] : vector<8x32xf32> to vector<8xf32>
    %32 = vector.shape_cast %31 : vector<8xf32> to vector<8x1xf32>
    %33 = math.sqrt %32 : vector<8x1xf32>
    %34 = arith.mulf %29, %33 : vector<8x1xf32>
    %cst_12 = arith.constant 9.99999997E-7 : f32
    %35 = vector.broadcast %cst_12 : f32 to vector<8x1xf32>
    %36 = arith.maximumf %34, %35 : vector<8x1xf32>
    %37 = arith.divf %23, %36 : vector<8x1xf32>
    %38 = vector.shape_cast %11 : vector<8x1xf32> to vector<1x8x1xf32>
    %cst_13 = arith.constant dense<0xFF800000> : vector<1xf32>
    %39 = vector.multi_reduction <maximumf>, %38, %cst_13 [1, 2] : vector<1x8x1xf32> to vector<1xf32>
    %40 = vector.shape_cast %39 : vector<1xf32> to vector<1x1x1xf32>
    %41 = vector.extract %40[0, 0, 0] : f32 from vector<1x1x1xf32>
    %c0_14 = arith.constant 0 : index
    %c0_15 = arith.constant 0 : index
    %42 = vector.load %arg5[%c0_14, %c0_15] : memref<1x1xf32, #tpu.memory_space<vmem>>, vector<1x1xf32>
    %43 = vector.broadcast %41 : f32 to vector<1x1xf32>
    %44 = arith.maximumf %42, %43 : vector<1x1xf32>
    %45 = arith.subf %42, %44 : vector<1x1xf32>
    %46 = math.exp %45 : vector<1x1xf32>
    %47 = vector.broadcast %44 : vector<1x1xf32> to vector<8x1xf32>
    %48 = arith.subf %11, %47 : vector<8x1xf32>
    %49 = math.exp %48 : vector<8x1xf32>
    %c0_16 = arith.constant 0 : index
    %c0_17 = arith.constant 0 : index
    %50 = vector.load %arg4[%c0_16, %c0_17] : memref<1x8xf32, #tpu.memory_space<vmem>>, vector<1x8xf32>
    %51 = vector.broadcast %46 : vector<1x1xf32> to vector<1x8xf32>
    %52 = arith.mulf %50, %51 : vector<1x8xf32>
    %53 = vector.broadcast %49 : vector<8x1xf32> to vector<8x8xf32>
    %54 = arith.mulf %14, %53 : vector<8x8xf32>
    %cst_18 = arith.constant dense<0.000000e+00> : vector<8xf32>
    %55 = vector.multi_reduction <add>, %54, %cst_18 [0] : vector<8x8xf32> to vector<8xf32>
    %56 = vector.shape_cast %55 : vector<8xf32> to vector<1x8xf32>
    %57 = arith.addf %52, %56 : vector<1x8xf32>
    %c0_19 = arith.constant 0 : index
    %c0_20 = arith.constant 0 : index
    %58 = vector.load %arg4[%c0_19, %c0_20] : memref<1x8xf32, #tpu.memory_space<vmem>>, vector<1x8xf32>
    tpu.vector_store %arg4[%c0_19, %c0_20], %57 {strides = array<i32>} : memref<1x8xf32, #tpu.memory_space<vmem>>, vector<1x8xf32>,
    %c0_21 = arith.constant 0 : index
    %c0_22 = arith.constant 0 : index
    %59 = vector.load %arg5[%c0_21, %c0_22] : memref<1x1xf32, #tpu.memory_space<vmem>>, vector<1x1xf32>
    tpu.vector_store %arg5[%c0_21, %c0_22], %44 {strides = array<i32>} : memref<1x1xf32, #tpu.memory_space<vmem>>, vector<1x1xf32>,
    %c0_23 = arith.constant 0 : index
    %60 = memref.load %arg6[%c0_23] : memref<1xf32, #tpu.memory_space<smem>>
    %61 = vector.shape_cast %25 : vector<8x1xf32> to vector<1x8x1xf32>
    %cst_24 = arith.constant dense<0.000000e+00> : vector<1xf32>
    %62 = vector.multi_reduction <add>, %61, %cst_24 [1, 2] : vector<1x8x1xf32> to vector<1xf32>
    %63 = vector.shape_cast %62 : vector<1xf32> to vector<1x1x1xf32>
    %64 = vector.extract %63[0, 0, 0] : f32 from vector<1x1x1xf32>
    %65 = arith.addf %60, %64 : f32
    %c0_25 = arith.constant 0 : index
    %66 = memref.load %arg6[%c0_25] : memref<1xf32, #tpu.memory_space<smem>>
    memref.store %65, %arg6[%c0_25] : memref<1xf32, #tpu.memory_space<smem>>
    %c0_26 = arith.constant 0 : index
    %67 = memref.load %arg7[%c0_26] : memref<1xf32, #tpu.memory_space<smem>>
    %68 = vector.shape_cast %18 : vector<8x1xf32> to vector<1x8x1xf32>
    %cst_27 = arith.constant dense<0.000000e+00> : vector<1xf32>
    %69 = vector.multi_reduction <add>, %68, %cst_27 [1, 2] : vector<1x8x1xf32> to vector<1xf32>
    %70 = vector.shape_cast %69 : vector<1xf32> to vector<1x1x1xf32>
    %71 = vector.extract %70[0, 0, 0] : f32 from vector<1x1x1xf32>
    %72 = arith.addf %67, %71 : f32
    %c0_28 = arith.constant 0 : index
    %73 = memref.load %arg7[%c0_28] : memref<1xf32, #tpu.memory_space<smem>>
    memref.store %72, %arg7[%c0_28] : memref<1xf32, #tpu.memory_space<smem>>
    %c0_29 = arith.constant 0 : index
    %74 = memref.load %arg8[%c0_29] : memref<1xf32, #tpu.memory_space<smem>>
    %75 = vector.shape_cast %37 : vector<8x1xf32> to vector<1x8x1xf32>
    %cst_30 = arith.constant dense<0.000000e+00> : vector<1xf32>
    %76 = vector.multi_reduction <add>, %75, %cst_30 [1, 2] : vector<1x8x1xf32> to vector<1xf32>
    %77 = vector.shape_cast %76 : vector<1xf32> to vector<1x1x1xf32>
    %78 = vector.extract %77[0, 0, 0] : f32 from vector<1x1x1xf32>
    %79 = arith.addf %74, %78 : f32
    %c0_31 = arith.constant 0 : index
    %80 = memref.load %arg8[%c0_31] : memref<1xf32, #tpu.memory_space<smem>>
    memref.store %79, %arg8[%c0_31] : memref<1xf32, #tpu.memory_space<smem>>
    %c0_i32_32 = arith.constant 0 : i32
    %81 = arith.cmpi eq, %arg0, %c0_i32_32 : i32
    %82 = arith.extui %81 : i1 to i32
    %c0_i32_33 = arith.constant 0 : i32
    %83 = arith.cmpi ne, %82, %c0_i32_33 : i32
    scf.if %83 {
      %c0_34 = arith.constant 0 : index
      %c0_35 = arith.constant 0 : index
      %84 = vector.load %arg4[%c0_34, %c0_35] : memref<1x8xf32, #tpu.memory_space<vmem>>, vector<1x8xf32>
      %85 = math.log %84 : vector<1x8xf32>
      %c0_36 = arith.constant 0 : index
      %c0_37 = arith.constant 0 : index
      %86 = vector.load %arg5[%c0_36, %c0_37] : memref<1x1xf32, #tpu.memory_space<vmem>>, vector<1x1xf32>
      %87 = vector.broadcast %86 : vector<1x1xf32> to vector<1x8xf32>
      %88 = arith.addf %85, %87 : vector<1x8xf32>
      %89 = vector.shape_cast %88 : vector<1x8xf32> to vector<1x1x8xf32>
      %cst_38 = arith.constant dense<0.000000e+00> : vector<1xf32>
      %90 = vector.multi_reduction <add>, %89, %cst_38 [1, 2] : vector<1x1x8xf32> to vector<1xf32>
      %91 = vector.shape_cast %90 : vector<1xf32> to vector<1x1x1xf32>
      %92 = vector.extract %91[0, 0, 0] : f32 from vector<1x1x1xf32>
      %c0_39 = arith.constant 0 : index
      %93 = memref.load %arg6[%c0_39] : memref<1xf32, #tpu.memory_space<smem>>
      %c0_40 = arith.constant 0 : index
      %94 = memref.load %arg7[%c0_40] : memref<1xf32, #tpu.memory_space<smem>>
      %95 = arith.subf %93, %94 : f32
      %cst_41 = arith.constant 0.000000e+00 : f32
      %96 = arith.subf %cst_41, %95 : f32
      %cst_42 = arith.constant 1.250000e-01 : f32
      %97 = arith.mulf %96, %cst_42 : f32
      %98 = arith.subf %93, %92 : f32
      %cst_43 = arith.constant 0.000000e+00 : f32
      %99 = arith.subf %cst_43, %98 : f32
      %cst_44 = arith.constant 1.250000e-01 : f32
      %100 = arith.mulf %99, %cst_44 : f32
      %101 = arith.addf %97, %100 : f32
      %cst_45 = arith.constant 5.000000e-01 : f32
      %102 = arith.mulf %101, %cst_45 : f32
      %c0_46 = arith.constant 0 : index
      %103 = memref.load %arg8[%c0_46] : memref<1xf32, #tpu.memory_space<smem>>
      %cst_47 = arith.constant 1.250000e-01 : f32
      %104 = arith.mulf %103, %cst_47 : f32
      %cst_48 = arith.constant 1.000000e+00 : f32
      %105 = arith.subf %cst_48, %104 : f32
      %cst_49 = arith.constant 1.000000e+00 : f32
      %106 = arith.mulf %105, %cst_49 : f32
      %107 = arith.addf %102, %106 : f32
      %108 = vector.broadcast %107 : f32 to vector<1x1xf32>
      %c0_50 = arith.constant 0 : index
      %c0_51 = arith.constant 0 : index
      %109 = vector.load %arg3[%c0_50, %c0_51] : memref<1x1xf32, #tpu.memory_space<vmem>>, vector<1x1xf32>
      tpu.vector_store %arg3[%c0_50, %c0_51], %108 {strides = array<i32>} : memref<1x1xf32, #tpu.memory_space<vmem>>, vector<1x1xf32>,
    } else {
    }
    return
  }
  func.func @transform_0(%arg0: i32) -> (i32, i32) {
    %c0_i32 = arith.constant 0 : i32
    %c0_i32_0 = arith.constant 0 : i32
    return %arg0, %c0_i32 : i32, i32
  }
  func.func @transform_1(%arg0: i32) -> (i32, i32) {
    %c0_i32 = arith.constant 0 : i32
    %c0_i32_0 = arith.constant 0 : i32
    %c0_i32_1 = arith.constant 0 : i32
    return %c0_i32, %c0_i32_0 : i32, i32
  }
  func.func @transform_2(%arg0: i32) -> (i32, i32) {
    %c0_i32 = arith.constant 0 : i32
    %c0_i32_0 = arith.constant 0 : i32
    %c0_i32_1 = arith.constant 0 : i32
    return %c0_i32, %c0_i32_0 : i32, i32
  }
}

module attributes {stable_mosaic.version = 11 : i64} {
  func.func @_contrastive_kernel(%arg0: i32, %arg1: memref<8x32xf32, #tpu.memory_space<vmem>>, %arg2: memref<8x32xf32, #tpu.memory_space<vmem>>, %arg3: memref<1x1xf32, #tpu.memory_space<vmem>>, %arg4: memref<1x8xf32, #tpu.memory_space<vmem>>, %arg5: memref<1x1xf32, #tpu.memory_space<vmem>>, %arg6: memref<1xf32, #tpu.memory_space<smem>>, %arg7: memref<1xf32, #tpu.memory_space<smem>>, %arg8: memref<1xf32, #tpu.memory_space<smem>>) attributes {dimension_semantics = [#tpu.dimension_semantics<arbitrary>], iteration_bounds = array<i64: 1>, scalar_prefetch = 0 : i64, scratch_operands = 5 : i64, tpu.core_type = #tpu.core_type<tc>, window_params = [{transform_indices = @transform_0, window_bounds = array<i64: 8, 32>}, {pipeline_mode = #tpu.pipeline_mode<synchronous>, transform_indices = @transform_1, window_bounds = array<i64: 8, 32>}, {pipeline_mode = #tpu.pipeline_mode<synchronous>, transform_indices = @transform_2, window_bounds = array<i64: 1, 1>}]} {
    %c0_i32 = arith.constant 0 : i32
    %0 = arith.cmpi eq, %arg0, %c0_i32 : i32
    %1 = arith.extui %0 : i1 to i32
    %c0_i32_0 = arith.constant 0 : i32
    %2 = arith.cmpi ne, %1, %c0_i32_0 : i32
    scf.if %2 {
      %cst_34 = arith.constant 0.000000e+00 : f32
      %84 = vector.broadcast %cst_34 : f32 to vector<1x8xf32>
      %c0_35 = arith.constant 0 : index
      %c0_36 = arith.constant 0 : index
      %85 = vector.load %arg4[%c0_35, %c0_36] : memref<1x8xf32, #tpu.memory_space<vmem>>, vector<1x8xf32>
      tpu.vector_store %arg4[%c0_35, %c0_36], %84 {strides = array<i32>} : memref<1x8xf32, #tpu.memory_space<vmem>>, vector<1x8xf32>,
      %cst_37 = arith.constant 0xFF800000 : f32
      %86 = vector.broadcast %cst_37 : f32 to vector<1x1xf32>
      %c0_38 = arith.constant 0 : index
      %c0_39 = arith.constant 0 : index
      %87 = vector.load %arg5[%c0_38, %c0_39] : memref<1x1xf32, #tpu.memory_space<vmem>>, vector<1x1xf32>
      tpu.vector_store %arg5[%c0_38, %c0_39], %86 {strides = array<i32>} : memref<1x1xf32, #tpu.memory_space<vmem>>, vector<1x1xf32>,
      %cst_40 = arith.constant 0.000000e+00 : f32
      %c0_41 = arith.constant 0 : index
      %88 = memref.load %arg6[%c0_41] : memref<1xf32, #tpu.memory_space<smem>>
      memref.store %cst_40, %arg6[%c0_41] : memref<1xf32, #tpu.memory_space<smem>>
      %cst_42 = arith.constant 0.000000e+00 : f32
      %c0_43 = arith.constant 0 : index
      %89 = memref.load %arg7[%c0_43] : memref<1xf32, #tpu.memory_space<smem>>
      memref.store %cst_42, %arg7[%c0_43] : memref<1xf32, #tpu.memory_space<smem>>
      %cst_44 = arith.constant 0.000000e+00 : f32
      %c0_45 = arith.constant 0 : index
      %90 = memref.load %arg8[%c0_45] : memref<1xf32, #tpu.memory_space<smem>>
      memref.store %cst_44, %arg8[%c0_45] : memref<1xf32, #tpu.memory_space<smem>>
    } else {
    }
    %c0 = arith.constant 0 : index
    %c0_1 = arith.constant 0 : index
    %3 = vector.load %arg1[%c0, %c0_1] : memref<8x32xf32, #tpu.memory_space<vmem>>, vector<8x32xf32>
    %cst = arith.constant 5.000000e+00 : f32
    %4 = vector.broadcast %cst : f32 to vector<8x32xf32>
    %5 = arith.mulf %3, %4 : vector<8x32xf32>
    %c0_2 = arith.constant 0 : index
    %c0_3 = arith.constant 0 : index
    %6 = vector.load %arg2[%c0_2, %c0_3] : memref<8x32xf32, #tpu.memory_space<vmem>>, vector<8x32xf32>
    %cst_4 = arith.constant dense<0.000000e+00> : vector<8x8xf32>
    %7 = tpu.matmul %5, %6, %cst_4 {dimension_numbers = #tpu.dot_dimension_numbers<[1], [1], [0], [0], [0, 0, 1, 0], [], []>, precision = #tpu.contract_precision<fp32>} : vector<8x32xf32>, vector<8x32xf32>, vector<8x8xf32> -> vector<8x8xf32>
    %c8_i32 = arith.constant 8 : i32
    %8 = arith.muli %arg0, %c8_i32 : i32
    %9 = tpu.assume_multiple %8, 8 : i32
    %cst_5 = arith.constant dense<0xFF800000> : vector<8xf32>
    %10 = vector.multi_reduction <maximumf>, %7, %cst_5 [1] : vector<8x8xf32> to vector<8xf32>
    %11 = vector.shape_cast %10 : vector<8xf32> to vector<8x1xf32>
    %12 = vector.broadcast %11 : vector<8x1xf32> to vector<8x8xf32>
    %13 = arith.subf %7, %12 : vector<8x8xf32>
    %14 = math.exp %13 : vector<8x8xf32>
    %cst_6 = arith.constant dense<0.000000e+00> : vector<8xf32>
    %15 = vector.multi_reduction <add>, %14, %cst_6 [1] : vector<8x8xf32> to vector<8xf32>
    %16 = vector.shape_cast %15 : vector<8xf32> to vector<8x1xf32>
    %17 = math.log %16 : vector<8x1xf32>
    %18 = arith.addf %17, %11 : vector<8x1xf32>
    %19 = arith.index_cast %9 : i32 to index
    %c0_7 = arith.constant 0 : index
    %20 = vector.load %arg2[%19, %c0_7] : memref<8x32xf32, #tpu.memory_space<vmem>>, vector<8x32xf32>
    %21 = arith.mulf %3, %20 : vector<8x32xf32>
    %cst_8 = arith.constant dense<0.000000e+00> : vector<8xf32>
    %22 = vector.multi_reduction <add>, %21, %cst_8 [1] : vector<8x32xf32> to vector<8xf32>
    %23 = vector.shape_cast %22 : vector<8xf32> to vector<8x1xf32>
    %cst_9 = arith.constant 5.000000e+00 : f32
    %24 = vector.broadcast %cst_9 : f32 to vector<8x1xf32>
    %25 = arith.mulf %23, %24 : vector<8x1xf32>
    %26 = arith.mulf %3, %3 : vector<8x32xf32>
    %cst_10 = arith.constant dense<0.000000e+00> : vector<8xf32>
    %27 = vector.multi_reduction <add>, %26, %cst_10 [1] : vector<8x32xf32> to vector<8xf32>
    %28 = vector.shape_cast %27 : vector<8xf32> to vector<8x1xf32>
    %29 = math.sqrt %28 : vector<8x1xf32>
    %30 = arith.mulf %20, %20 : vector<8x32xf32>
    %cst_11 = arith.constant dense<0.000000e+00> : vector<8xf32>
    %31 = vector.multi_reduction <add>, %30, %cst_11 [1] : vector<8x32xf32> to vector<8xf32>
    %32 = vector.shape_cast %31 : vector<8xf32> to vector<8x1xf32>
    %33 = math.sqrt %32 : vector<8x1xf32>
    %34 = arith.mulf %29, %33 : vector<8x1xf32>
    %cst_12 = arith.constant 9.99999997E-7 : f32
    %35 = vector.broadcast %cst_12 : f32 to vector<8x1xf32>
    %36 = arith.maximumf %34, %35 : vector<8x1xf32>
    %37 = arith.divf %23, %36 : vector<8x1xf32>
    %38 = vector.shape_cast %11 : vector<8x1xf32> to vector<1x8x1xf32>
    %cst_13 = arith.constant dense<0xFF800000> : vector<1xf32>
    %39 = vector.multi_reduction <maximumf>, %38, %cst_13 [1, 2] : vector<1x8x1xf32> to vector<1xf32>
    %40 = vector.shape_cast %39 : vector<1xf32> to vector<1x1x1xf32>
    %41 = vector.extract %40[0, 0, 0] : f32 from vector<1x1x1xf32>
    %c0_14 = arith.constant 0 : index
    %c0_15 = arith.constant 0 : index
    %42 = vector.load %arg5[%c0_14, %c0_15] : memref<1x1xf32, #tpu.memory_space<vmem>>, vector<1x1xf32>
    %43 = vector.broadcast %41 : f32 to vector<1x1xf32>
    %44 = arith.maximumf %42, %43 : vector<1x1xf32>
    %45 = arith.subf %42, %44 : vector<1x1xf32>
    %46 = math.exp %45 : vector<1x1xf32>
    %47 = vector.broadcast %44 : vector<1x1xf32> to vector<8x1xf32>
    %48 = arith.subf %11, %47 : vector<8x1xf32>
    %49 = math.exp %48 : vector<8x1xf32>
    %c0_16 = arith.constant 0 : index
    %c0_17 = arith.constant 0 : index
    %50 = vector.load %arg4[%c0_16, %c0_17] : memref<1x8xf32, #tpu.memory_space<vmem>>, vector<1x8xf32>
    %51 = vector.broadcast %46 : vector<1x1xf32> to vector<1x8xf32>
    %52 = arith.mulf %50, %51 : vector<1x8xf32>
    %53 = vector.broadcast %49 : vector<8x1xf32> to vector<8x8xf32>
    %54 = arith.mulf %14, %53 : vector<8x8xf32>
    %cst_18 = arith.constant dense<0.000000e+00> : vector<8xf32>
    %55 = vector.multi_reduction <add>, %54, %cst_18 [0] : vector<8x8xf32> to vector<8xf32>
    %56 = vector.shape_cast %55 : vector<8xf32> to vector<1x8xf32>
    %57 = arith.addf %52, %56 : vector<1x8xf32>
    %c0_19 = arith.constant 0 : index
    %c0_20 = arith.constant 0 : index
    %58 = vector.load %arg4[%c0_19, %c0_20] : memref<1x8xf32, #tpu.memory_space<vmem>>, vector<1x8xf32>
    tpu.vector_store %arg4[%c0_19, %c0_20], %57 {strides = array<i32>} : memref<1x8xf32, #tpu.memory_space<vmem>>, vector<1x8xf32>,
    %c0_21 = arith.constant 0 : index
    %c0_22 = arith.constant 0 : index
    %59 = vector.load %arg5[%c0_21, %c0_22] : memref<1x1xf32, #tpu.memory_space<vmem>>, vector<1x1xf32>
    tpu.vector_store %arg5[%c0_21, %c0_22], %44 {strides = array<i32>} : memref<1x1xf32, #tpu.memory_space<vmem>>, vector<1x1xf32>,
    %c0_23 = arith.constant 0 : index
    %60 = memref.load %arg6[%c0_23] : memref<1xf32, #tpu.memory_space<smem>>
    %61 = vector.shape_cast %25 : vector<8x1xf32> to vector<1x8x1xf32>
    %cst_24 = arith.constant dense<0.000000e+00> : vector<1xf32>
    %62 = vector.multi_reduction <add>, %61, %cst_24 [1, 2] : vector<1x8x1xf32> to vector<1xf32>
    %63 = vector.shape_cast %62 : vector<1xf32> to vector<1x1x1xf32>
    %64 = vector.extract %63[0, 0, 0] : f32 from vector<1x1x1xf32>
    %65 = arith.addf %60, %64 : f32
    %c0_25 = arith.constant 0 : index
    %66 = memref.load %arg6[%c0_25] : memref<1xf32, #tpu.memory_space<smem>>
    memref.store %65, %arg6[%c0_25] : memref<1xf32, #tpu.memory_space<smem>>
    %c0_26 = arith.constant 0 : index
    %67 = memref.load %arg7[%c0_26] : memref<1xf32, #tpu.memory_space<smem>>
    %68 = vector.shape_cast %18 : vector<8x1xf32> to vector<1x8x1xf32>
    %cst_27 = arith.constant dense<0.000000e+00> : vector<1xf32>
    %69 = vector.multi_reduction <add>, %68, %cst_27 [1, 2] : vector<1x8x1xf32> to vector<1xf32>
    %70 = vector.shape_cast %69 : vector<1xf32> to vector<1x1x1xf32>
    %71 = vector.extract %70[0, 0, 0] : f32 from vector<1x1x1xf32>
    %72 = arith.addf %67, %71 : f32
    %c0_28 = arith.constant 0 : index
    %73 = memref.load %arg7[%c0_28] : memref<1xf32, #tpu.memory_space<smem>>
    memref.store %72, %arg7[%c0_28] : memref<1xf32, #tpu.memory_space<smem>>
    %c0_29 = arith.constant 0 : index
    %74 = memref.load %arg8[%c0_29] : memref<1xf32, #tpu.memory_space<smem>>
    %75 = vector.shape_cast %37 : vector<8x1xf32> to vector<1x8x1xf32>
    %cst_30 = arith.constant dense<0.000000e+00> : vector<1xf32>
    %76 = vector.multi_reduction <add>, %75, %cst_30 [1, 2] : vector<1x8x1xf32> to vector<1xf32>
    %77 = vector.shape_cast %76 : vector<1xf32> to vector<1x1x1xf32>
    %78 = vector.extract %77[0, 0, 0] : f32 from vector<1x1x1xf32>
    %79 = arith.addf %74, %78 : f32
    %c0_31 = arith.constant 0 : index
    %80 = memref.load %arg8[%c0_31] : memref<1xf32, #tpu.memory_space<smem>>
    memref.store %79, %arg8[%c0_31] : memref<1xf32, #tpu.memory_space<smem>>
    %c0_i32_32 = arith.constant 0 : i32
    %81 = arith.cmpi eq, %arg0, %c0_i32_32 : i32
    %82 = arith.extui %81 : i1 to i32
    %c0_i32_33 = arith.constant 0 : i32
    %83 = arith.cmpi ne, %82, %c0_i32_33 : i32
    scf.if %83 {
      %c0_34 = arith.constant 0 : index
      %c0_35 = arith.constant 0 : index
      %84 = vector.load %arg4[%c0_34, %c0_35] : memref<1x8xf32, #tpu.memory_space<vmem>>, vector<1x8xf32>
      %85 = math.log %84 : vector<1x8xf32>
      %c0_36 = arith.constant 0 : index
      %c0_37 = arith.constant 0 : index
      %86 = vector.load %arg5[%c0_36, %c0_37] : memref<1x1xf32, #tpu.memory_space<vmem>>, vector<1x1xf32>
      %87 = vector.broadcast %86 : vector<1x1xf32> to vector<1x8xf32>
      %88 = arith.addf %85, %87 : vector<1x8xf32>
      %89 = vector.shape_cast %88 : vector<1x8xf32> to vector<1x1x8xf32>
      %cst_38 = arith.constant dense<0.000000e+00> : vector<1xf32>
      %90 = vector.multi_reduction <add>, %89, %cst_38 [1, 2] : vector<1x1x8xf32> to vector<1xf32>
      %91 = vector.shape_cast %90 : vector<1xf32> to vector<1x1x1xf32>
      %92 = vector.extract %91[0, 0, 0] : f32 from vector<1x1x1xf32>
      %c0_39 = arith.constant 0 : index
      %93 = memref.load %arg6[%c0_39] : memref<1xf32, #tpu.memory_space<smem>>
      %c0_40 = arith.constant 0 : index
      %94 = memref.load %arg7[%c0_40] : memref<1xf32, #tpu.memory_space<smem>>
      %95 = arith.subf %93, %94 : f32
      %cst_41 = arith.constant 0.000000e+00 : f32
      %96 = arith.subf %cst_41, %95 : f32
      %cst_42 = arith.constant 1.250000e-01 : f32
      %97 = arith.mulf %96, %cst_42 : f32
      %98 = arith.subf %93, %92 : f32
      %cst_43 = arith.constant 0.000000e+00 : f32
      %99 = arith.subf %cst_43, %98 : f32
      %cst_44 = arith.constant 1.250000e-01 : f32
      %100 = arith.mulf %99, %cst_44 : f32
      %101 = arith.addf %97, %100 : f32
      %cst_45 = arith.constant 5.000000e-01 : f32
      %102 = arith.mulf %101, %cst_45 : f32
      %c0_46 = arith.constant 0 : index
      %103 = memref.load %arg8[%c0_46] : memref<1xf32, #tpu.memory_space<smem>>
      %cst_47 = arith.constant 1.250000e-01 : f32
      %104 = arith.mulf %103, %cst_47 : f32
      %cst_48 = arith.constant 1.000000e+00 : f32
      %105 = arith.subf %cst_48, %104 : f32
      %cst_49 = arith.constant 1.000000e+00 : f32
      %106 = arith.mulf %105, %cst_49 : f32
      %107 = arith.addf %102, %106 : f32
      %108 = vector.broadcast %107 : f32 to vector<1x1xf32>
      %c0_50 = arith.constant 0 : index
      %c0_51 = arith.constant 0 : index
      %109 = vector.load %arg3[%c0_50, %c0_51] : memref<1x1xf32, #tpu.memory_space<vmem>>, vector<1x1xf32>
      tpu.vector_store %arg3[%c0_50, %c0_51], %108 {strides = array<i32>} : memref<1x1xf32, #tpu.memory_space<vmem>>, vector<1x1xf32>,
    } else {
    }
    return
  }
  func.func @transform_0(%arg0: i32) -> (i32, i32) {
    %c0_i32 = arith.constant 0 : i32
    %c0_i32_0 = arith.constant 0 : i32
    return %arg0, %c0_i32 : i32, i32
  }
  func.func @transform_1(%arg0: i32) -> (i32, i32) {
    %c0_i32 = arith.constant 0 : i32
    %c0_i32_0 = arith.constant 0 : i32
    %c0_i32_1 = arith.constant 0 : i32
    return %c0_i32, %c0_i32_0 : i32, i32
  }
  func.func @transform_2(%arg0: i32) -> (i32, i32) {
    %c0_i32 = arith.constant 0 : i32
    %c0_i32_0 = arith.constant 0 : i32
    %c0_i32_1 = arith.constant 0 : i32
    return %c0_i32, %c0_i32_0 : i32, i32
  }
}

</mosaic_0001>

<bundles_post_ra>
// kernel: tpu_custom_call.1
= control target key start
LH: loop header
LB: loop body
LE: loop exit
PB: predicated region body
PF: predicated region fallthrough
CT: control target
= control target key end

     0   :  { %7 = vsyncpa [#allocation8], 0  ;;  %s982_s0 = inlined_call_operand.hbm [shape: f32[8,32], index: 0, kind: input, shape index: {}]   ;;  %s983_s1 = inlined_call_operand.hbm [shape: f32[8,32], index: 1, kind: input, shape index: {}]   ;;  %s984_s2 = inlined_call_operand.hbm [shape: f32[1,1], index: 2, kind: output, shape index: {}]  }
   0x1   :  { %8 = vsyncpa [#allocation11], 0 }
   0x2   :  { %9 = vsyncpa [#allocation9], 0  ;;  %s864_s9 = smov [#allocation7]   ;;  %s865_s11 = smov [#allocation10]  }
   0x3   :  { %s16_s10 = sshll.u32 %s864_s9, 4  ;;  %s26_s12 = sshll.u32 %s865_s11, 4  ;;  %s17_s10 = int_to_ptr.vmem [resolvable:$true] %s16_s10  ;;  %s27_s12 = int_to_ptr.vmem [resolvable:$true] %s26_s12 }
   0x4   :  { %s792_s15 = scalar_lea.hbm %s982_s0, 128 }
   0x5   :  { %p793_p0 = scmp.ne.s32.totalorder %s982_s0, %s792_s15  ;;  %p796_p1 = scmp.lt.u32.totalorder %s792_s15, %s982_s0 }
   0x7   :  { %p798_p2 = pnand %p796_p1, %p793_p0 }
   0x9   :  { %801 = shalt.err (!%p798_p2)
}
   0xa   :  { %s802_s20 = scalar_lea.vmem %s17_s10, 128  ;;  %p807_p4 = scmp.lt.s32.totalorder %s17_s10, %s17_s10 }
   0xb   :  { %p803_p3 = scmp.ne.s32.totalorder %s17_s10, %s802_s20  ;;  %p808_p5 = scmp.lt.s32.totalorder %s802_s20, %s802_s20 }
   0xd   :  { %p809_p6 = por %p808_p5, %p807_p4 }
   0xf   :  { %p810_p7 = pnand %p809_p6, %p803_p3 }
  0x11   :  { %813 = shalt.err (!%p810_p7)
}
  0x12   :  { %19 = dma.hbm_to_vmem [thread:$0]  %s982_s0, 128, %s17_s10, [#allocation8]  }
  0x13   :  { %s814_s25 = scalar_lea.hbm %s983_s1, 128 }
  0x14   :  { %p815_p8 = scmp.ne.s32.totalorder %s983_s1, %s814_s25  ;;  %p818_p9 = scmp.lt.u32.totalorder %s814_s25, %s983_s1 }
  0x16   :  { %p820_p10 = pnand %p818_p9, %p815_p8 }
  0x18   :  { %823 = shalt.err (!%p820_p10)
}
  0x19   :  { %s824_s30 = scalar_lea.vmem %s27_s12, 128  ;;  %p829_p12 = scmp.lt.s32.totalorder %s27_s12, %s27_s12 }
  0x1a   :  { %p825_p11 = scmp.ne.s32.totalorder %s27_s12, %s824_s30  ;;  %p830_p13 = scmp.lt.s32.totalorder %s824_s30, %s824_s30 }
  0x1c   :  { %p831_p0 = por %p830_p13, %p829_p12 }
  0x1e   :  { %p832_p1 = pnand %p831_p0, %p825_p11 }
  0x20   :  { %835 = shalt.err (!%p832_p1)
}
  0x21   :  { %29 = dma.hbm_to_vmem [thread:$0]  %s983_s1, 128, %s27_s12, [#allocation11]  }
  0x22   :  { %858 = dma.done.wait [#allocation8], 128  }
  0x23   :  { %859 = vsyncadd [#allocation8], 4294967168 }
  0x24   :  { %860 = dma.done.wait [#allocation11], 128  }
  0x25   :  { %861 = vsyncadd [#allocation11], 4294967168  ;;  %v866_v0 = vmov 0.0   ;;  %vm867_vm0 = vmmov 0   ;;  %vm53_vm1 = vcmask 261120   ;;  %v916_v1 = vld [vmem:[#allocation10] sm:$0xff]  ;;  %v567_v35 = vlaneseq }
  0x26   :  { %733 = vmatprep.subr.mxu0 %v866_v0  ;;  %718 = vmatprep.subr.mxu1 %v866_v0  ;;  %v918_v2 = vld [vmem:[#allocation7] sm:$0xff]  ;;  %v58_v3 = vsel %vm53_vm1, %v916_v1, 0  ;;  %vm507_vm2 = vcmask 64512   ;;  %v538_v23 = vmul.f32 %v916_v1, %v916_v1  ;;  %vm42_vm3 = vcmask 0   ;;  %s870_s16 = smov [#allocation12]  }
  0x27   :  { %735 = vmatprep.mubr.msk.f32.mxu0 %vm867_vm0, %v866_v0  ;;  %720 = vmatprep.mubr.msk.f32.mxu1 %vm867_vm0, %v866_v0  ;;  %v51_v4 = vmul.f32 5.0, %v918_v2  ;;  %v61_v5 = vand.u32 4294901760, %v58_v3  ;;  %v527_v22 = vmul.f32 %v918_v2, %v918_v2  ;;  %v868_v24 = vmov -inf   ;;  %s696_s17 = sshll.u32 %s870_s16, 4  ;;  %s697_s17 = int_to_ptr.vmem [resolvable:$true] %s696_s17 }
  0x28   :  { %43 = vst.msk [vmem:[#allocation3] sm:$0x1] %vm42_vm3, %v868_v24  ;;  %v539_v26 = vsel %vm53_vm1, %v538_v23, 0.0  ;;  %v869_v27 = vmov 0   ;;  %vm40_vm4 = vcmask 57344   ;;  %v568_v36 = vshrl.u32 %v567_v35, 7  ;;  %p841_p3 = scmp.lt.s32.totalorder %s697_s17, %s697_s17 }
  0x29   :  { %v55_v6 = vsel %vm53_vm1, %v51_v4, 0  ;;  %v138_v7 = vsub.f32 %v58_v3, %v61_v5  ;;  %734 = vmatpush3.xpose.msra.mxu0 %v61_v5  ;;  %719 = vmatpush3.xpose.msra.mxu1 %v61_v5  ;;  %v528_v25 = vsel %vm53_vm1, %v527_v22, 0.0  ;;  %41 = vst.msk [vmem:[#allocation2] sm:$0x1] %vm40_vm4, %v866_v0  ;;  %v522_v50 = vmul.f32 %v916_v1, %v918_v2  ;;  %s836_s21 = scalar_lea.vmem %s697_s17, 16  ;;  %s840_s22 = scalar_lea.vmem %s697_s17, 32 }
  0x2a   :  { %v126_v8 = vand.u32 4294901760, %v55_v6  ;;  %723 = vmatprep.subr.mxu1 %v866_v0  ;;  %738 = vmatprep.subr.mxu0 %v866_v0  ;;  %v950_v38 = vsub.s32 0, %v568_v36  ;;  %vm605_vm9 = vcmask 7168   ;;  %p837_p2 = scmp.ne.s32.totalorder %s697_s17, %s836_s21  ;;  %p842_p4 = scmp.lt.s32.totalorder %s840_s22, %s836_s21 }
  0x2b   :  { %v139_v10 = vand.u32 4294901760, %v138_v7  ;;  %529 = vadd.xlane.f32.xlu1 %v528_v25  ;;  %775 = vset.pattern.permute.xlu0 %v869_v27  ;;  %v523_v51 = vsel %vm53_vm1, %v522_v50, 0.0 }
  0x2c   :  { %v127_v9 = vsub.f32 %v55_v6, %v126_v8  ;;  %774 = vset.pattern.permute.xlu1 %v869_v27  ;;  %p843_p5 = por %p842_p4, %p841_p3 }
  0x2d   :  { %v140_v12 = vsub.f32 %v138_v7, %v139_v10 }
  0x2e   :  { %v128_v11 = vand.u32 4294901760, %v127_v9  ;;  %p844_p6 = pnand %p843_p5, %p837_p2 }
  0x2f   :  { %v141_v14 = vand.u32 4294901760, %v140_v12  ;;  %540 = vadd.xlane.f32.xlu1 %v539_v26  ;;  %v560_v37 = vld [vmem:[#allocation3] sm:$0x1] }
  0x30   :  { %736 = vmatmul.mubr.f32.vlgmr.msra.gmra.mrb[0].mxu0 %v128_v11  ;;  %v129_v13 = vsub.f32 %v127_v9, %v128_v11  ;;  %v575_v2 = vld [vmem:[#allocation2] sm:$0x1] }
  0x31   :  { %739 = vmatpush3.xpose.msra.mxu0 %v139_v10  ;;  %740 = vmatprep.mubr.msk.f32.mxu0 %vm867_vm0, %v866_v0 }
  0x32   :  { %v130_v15 = vand.u32 4294901760, %v129_v13  ;;  %743 = vmatprep.subr.mxu0 %v866_v0 }
  0x34   :  { %721 = vmatmul.mubr.f32.vlgmr.msra.gmra.mrb[0].mxu1 %v130_v15 }
  0x35   :  { %724 = vmatpush3.xpose.msra.mxu1 %v141_v14  ;;  %725 = vmatprep.mubr.msk.f32.mxu1 %vm867_vm0, %v866_v0 }
  0x36   :  { %728 = vmatprep.subr.mxu1 %v866_v0 }
  0x38   :  { %741 = vmatmul.mubr.f32.vlgmr.msra.gmra.mrb[0].mxu0 %v126_v8 }
  0x39   :  { %744 = vmatpush3.xpose.msra.mxu0 %v61_v5  ;;  %745 = vmatprep.mubr.msk.f32.mxu0 %vm867_vm0, %v866_v0 }
  0x3c   :  { %726 = vmatmul.mubr.f32.vlgmr.msra.gmra.mrb[0].mxu1 %v126_v8 }
  0x3d   :  { %729 = vmatpush3.xpose.msra.mxu1 %v138_v7  ;;  %730 = vmatprep.mubr.msk.f32.mxu1 %vm867_vm0, %v866_v0 }
  0x40   :  { %746 = vmatmul.mubr.f32.vlgmr.msra.gmra.mrb[0].mxu0 %v126_v8 }
  0x44   :  { %731 = vmatmul.mubr.f32.vlgmr.msra.gmra.mrb[0].mxu1 %v127_v9 }
  0xb8   :  { %v530_v55 = vpop.xlane.xlu1 %529 }
  0xb9   :  { %vm533_vm5 = vcmp.eq.f32.partialorder %v530_v55, inf  ;;  %v536_v11 = vand.u32 2147483648, %v530_v55  ;;  %vm535_vm7 = vcmp.eq.f32.partialorder %v530_v55, 0.0 }
  0xbc   :  { %v541_v57 = vpop.xlane.xlu1 %540 }
  0xbd   :  { %vm544_vm6 = vcmp.eq.f32.partialorder %v541_v57, inf  ;;  %v547_v12 = vand.u32 2147483648, %v541_v57  ;;  %vm546_vm8 = vcmp.eq.f32.partialorder %v541_v57, 0.0 }
 0x113   :  { %v502_v16 = vpop.f32.mrb[0].mxu0 }
 0x114   :  { %v747_v17 = vpop.f32.mrb[1].mxu0 }
 0x117   :  { %v282_v18 = vpop.f32.mrb[0].mxu1 }
 0x118   :  { %v748_v19 = vadd.f32 %v502_v16, %v282_v18  ;;  %v732_v20 = vpop.f32.mrb[1].mxu1 }
 0x11a   :  { %v508_v21 = vsel %vm507_vm2, %v748_v19, -inf }
 0x11b   :  { %509 = vmax.xlane.f32.xlu0 %v508_v21 }
 0x1a8   :  { %v944_v28 = vpop.xlane.xlu0 %509 }
 0x1a9   :  { %v553_v29 = vrot.slane %v944_v28, 4  ;;  %v511_v48 = vsub.f32 %v748_v19, %v944_v28 }
 0x1ab   :  { %v554_v30 = vmax.f32 %v944_v28, %v553_v29  ;;  %v512_v49 = vmul.f32 1.442695, %v511_v48 }
 0x1ad   :  { %v555_v31 = vrot.slane %v554_v30, 2 }
 0x1af   :  { %v556_v32 = vmax.f32 %v554_v30, %v555_v31 }
 0x1b1   :  { %v557_v33 = vrot.slane %v556_v32, 1 }
 0x1b3   :  { %v558_v34 = vmax.f32 %v556_v32, %v557_v33 }
 0x1b5   :  { %757 = vpush %v558_v34 }
 0x1e6   :  { %s758_s1 = spop %757 }
 0x1e7   :  { %v561_v39 = vstv %s758_s1 }
 0x1e8   :  { %v562_v40 = vmax.f32 %v560_v37, %v561_v39 }
 0x1ea   :  { %v563_v41 = vsub.f32 %v560_v37, %v562_v40  ;;  %v570_v42 = vrot.slane %v562_v40, %v950_v38  ;;  %603 = vst.msk [vmem:[#allocation3] sm:$0x1] %vm42_vm3, %v562_v40 }
 0x1ec   :  { %v564_v43 = vmul.f32 1.442695, %v563_v41  ;;  %v572_v44 = vsub.f32 %v944_v28, %v570_v42 }
 0x1ee   :  { %776 = vpow2.f32 %v564_v43  ;;  %v573_v45 = vmul.f32 1.442695, %v572_v44 }
 0x1f0   :  { %778 = vpow2.f32 %v573_v45 }
 0x1f1   :  { %780 = vpow2.f32 %v512_v49  ;;  %v653_v54 = vld [vmem:[#allocation3] sm:$0x1] }
 0x1f2   :  { %782 = vrsqrt.f32 %v530_v55 }
 0x1f3   :  { %784 = vrsqrt.f32 %v541_v57 }
 0x1f8   :  { %v777_v46 = vpop.eup %776 }
 0x1f9   :  { %578 = vperm.xlu1 %774, %v777_v46  }
 0x1fa   :  { %v779_v47 = vpop.eup %778 }
 0x1fb   :  { %588 = vperm.xlu0 %775, %v779_v47   ;;  %v781_v52 = vpop.eup %780 }
 0x1fc   :  { %v514_v53 = vsel %vm507_vm2, %v781_v52, 0.0  ;;  %v783_v4 = vpop.eup %782 }
 0x1fd   :  { %v785_v5 = vpop.eup %784  ;;  %v532_v9 = vmul.f32 %v783_v4, %v530_v55 }
 0x1fe   :  { %v543_v10 = vmul.f32 %v785_v5, %v541_v57 }
 0x1ff   :  { %v534_v13 = vsel %vm533_vm5, %v530_v55, %v532_v9 }
 0x200   :  { %v545_v14 = vsel %vm544_vm6, %v541_v57, %v543_v10  ;;  %v537_v15 = vsel %vm535_vm7, %v536_v11, %v534_v13 }
 0x201   :  { %v548_v16 = vsel %vm546_vm8, %v547_v12, %v545_v14 }
 0x202   :  { %v549_v17 = vmul.f32 %v548_v16, %v537_v15 }
 0x204   :  { %v550_v18 = vmax.f32 %v549_v17, 1e-06 }
 0x206   :  { %786 = vrcp.f32 %v550_v18 }
 0x210   :  { %v787_v19 = vpop.eup %786 }
 0x21a   :  { %524 = vadd.xlane.f32.xlu0 %v523_v51 }
 0x21d   :  { %515 = vadd.xlane.f32.xlu1 %v514_v53 }
 0x22e   :  { %656 = vperm.xlu1 %774, %v653_v54  }
 0x278   :  { %v579_v62 = vpop.permute.xlu1 %578 }
 0x279   :  { %v584_v0 = vrot.slane %v579_v62, %v950_v38 }
 0x27a   :  { %v589_v56 = vpop.permute.xlu0 %588 }
 0x27b   :  { %v591_v58 = vmul.f32 %v781_v52, %v589_v56  ;;  %v585_v6 = vmul.f32 %v584_v0, %v575_v2 }
 0x27d   :  { %v592_v59 = vsel %vm507_vm2, %v591_v58, 0.0 }
 0x27e   :  { %v593_v60 = vrot.slane %v592_v59, 4 }
 0x280   :  { %v594_v61 = vadd.f32 %v593_v60, %v592_v59 }
 0x282   :  { %v595_v63 = vrot.slane %v594_v61, 2 }
 0x284   :  { %v596_v1 = vadd.f32 %v595_v63, %v594_v61 }
 0x286   :  { %v597_v3 = vrot.slane %v596_v1, 1 }
 0x288   :  { %v598_v7 = vadd.f32 %v597_v3, %v596_v1 }
 0x28a   :  { %v599_v8 = vadd.f32 %v598_v7, %v585_v6 }
 0x28c   :  { %601 = vst.msk [vmem:[#allocation2] sm:$0x1] %vm40_vm4, %v599_v8 }
 0x293   :  { %v650_v21 = vld [vmem:[#allocation2] sm:$0x1] }
 0x294   :  { %788 = vlog2.f32 %v650_v21 }
 0x29e   :  { %v789_v29 = vpop.eup %788 }
 0x29f   :  { %v652_v34 = vmul.f32 0.6931472, %v789_v29 }
 0x2a7   :  { %v525_v20 = vpop.xlane.xlu0 %524 }
 0x2a8   :  { %v526_v22 = vmul.f32 5.0, %v525_v20  ;;  %v552_v23 = vmul.f32 %v787_v19, %v525_v20 }
 0x2aa   :  { %v516_v24 = vpop.xlane.xlu1 %515  ;;  %v634_v25 = vsel %vm605_vm9, %v552_v23, 0.0  ;;  %v606_v26 = vsel %vm605_vm9, %v526_v22, 0.0 }
 0x2ab   :  { %790 = vlog2.f32 %v516_v24  ;;  %635 = vadd.xlane.f32.xlu0 %v634_v25  ;;  %607 = vadd.xlane.f32.xlu1 %v606_v26 }
 0x2ae   :  { %v657_v27 = vpop.permute.xlu1 %656 }
 0x2af   :  { %v662_v32 = vrot.slane %v657_v27, %v950_v38 }
 0x2b1   :  { %v663_v36 = vadd.f32 %v662_v32, %v652_v34 }
 0x2b3   :  { %v664_v37 = vsel %vm40_vm4, %v663_v36, 0.0 }
 0x2b5   :  { %v791_v30 = vpop.eup %790 }
 0x2b6   :  { %v518_v31 = vmul.f32 0.6931472, %v791_v30 }
 0x2b8   :  { %v519_v33 = vadd.f32 %v518_v31, %v944_v28 }
 0x2ba   :  { %v620_v35 = vsel %vm605_vm9, %v519_v33, 0.0 }
 0x2bb   :  { %621 = vadd.xlane.f32.xlu0 %v620_v35 }
 0x2bf   :  { %665 = vadd.xlane.f32.xlu0 %v664_v37 }
 0x338   :  { %v608_v39 = vpop.xlane.xlu1 %607  ;;  %v636_v42 = vpop.xlane.xlu0 %635 }
 0x339   :  { %v609_v40 = vrot.slane %v608_v39, 4  ;;  %v637_v45 = vrot.slane %v636_v42, 4 }
 0x33b   :  { %v610_v41 = vadd.f32 %v609_v40, %v608_v39  ;;  %v638_v38 = vadd.f32 %v637_v45, %v636_v42 }
 0x33d   :  { %v611_v43 = vrot.slane %v610_v41, 2  ;;  %v639_v28 = vrot.slane %v638_v38, 2 }
 0x33f   :  { %v612_v44 = vadd.f32 %v611_v43, %v610_v41  ;;  %v640_v52 = vadd.f32 %v639_v28, %v638_v38 }
 0x341   :  { %v613_v46 = vrot.slane %v612_v44, 1  ;;  %v641_v57 = vrot.slane %v640_v52, 1 }
 0x343   :  { %v614_v47 = vadd.f32 %v613_v46, %v612_v44  ;;  %v642_v62 = vadd.f32 %v641_v57, %v640_v52 }
 0x345   :  { %759 = vpush %v614_v47 }
 0x348   :  { %v622_v48 = vpop.xlane.xlu0 %621 }
 0x349   :  { %v623_v49 = vrot.slane %v622_v48, 4 }
 0x34b   :  { %v624_v50 = vadd.f32 %v623_v49, %v622_v48 }
 0x34c   :  { %v666_v51 = vpop.xlane.xlu0 %665 }
 0x34d   :  { %v625_v53 = vrot.slane %v624_v50, 2  ;;  %v667_v54 = vrot.slane %v666_v51, 4 }
 0x34f   :  { %v668_v55 = vadd.f32 %v667_v54, %v666_v51  ;;  %v626_v56 = vadd.f32 %v625_v53, %v624_v50 }
 0x351   :  { %v669_v58 = vrot.slane %v668_v55, 2  ;;  %v627_v59 = vrot.slane %v626_v56, 1 }
 0x353   :  { %v670_v60 = vadd.f32 %v669_v58, %v668_v55  ;;  %v628_v61 = vadd.f32 %v627_v59, %v626_v56 }
 0x355   :  { %761 = vpush %v628_v61  ;;  %v671_v63 = vrot.slane %v670_v60, 1 }
 0x356   :  { %763 = vpush %v642_v62 }
 0x357   :  { %v672_v0 = vadd.f32 %v671_v63, %v670_v60 }
 0x359   :  { %765 = vpush %v672_v0 }
 0x376   :  { %s760_s4 = spop %759 }
 0x386   :  { %s762_s5 = spop %761 }
 0x387   :  { %s676_s6 = ssub.f32 %s760_s4, %s762_s5  ;;  %s764_s7 = spop %763 }
 0x388   :  { %s685_s11 = smul.f32 0.125, %s764_s7 }
 0x389   :  { %s677_s8 = ssub.f32 0.0, %s676_s6 }
 0x38a   :  { %s766_s9 = spop %765  ;;  %s686_s18 = ssub.f32 1.0, %s685_s11 }
 0x38b   :  { %s679_s10 = ssub.f32 %s760_s4, %s766_s9  ;;  %s678_s13 = smul.f32 0.125, %s677_s8 }
 0x38d   :  { %s680_s12 = ssub.f32 0.0, %s679_s10 }
 0x38f   :  { %s681_s14 = smul.f32 0.125, %s680_s12 }
 0x391   :  { %s682_s15 = sadd.f32 %s681_s14, %s678_s13 }
 0x393   :  { %s683_s19 = smul.f32 0.5, %s682_s15 }
 0x395   :  { %s687_s20 = sadd.f32 %s686_s18, %s683_s19 }
 0x397   :  { %v688_v1 = vstv %s687_s20 }
 0x398   :  { %689 = vst.msk [vmem:[#allocation12] sm:$0x1] %vm42_vm3, %v688_v1 }
 0x399   :  { %847 = shalt.err (!%p844_p6)
}
 0x39a   :  { %s848_s25 = scalar_lea.hbm %s984_s2, 16 }
 0x39b   :  { %p849_p7 = scmp.ne.s32.totalorder %s984_s2, %s848_s25  ;;  %p852_p8 = scmp.lt.u32.totalorder %s848_s25, %s984_s2 }
 0x39d   :  { %p854_p9 = pnand %p852_p8, %p849_p7 }
 0x39f   :  { %857 = shalt.err (!%p854_p9)
}
 0x3a0   :  { %699 = dma.vmem_to_hbm [thread:$0]  %s697_s17, 16, %s984_s2, [#allocation9]  }
 0x3a1   :  { %862 = dma.done.wait [#allocation9], 16  }
 0x3a2   :  { %863 = vsyncadd [#allocation9], 4294967280 }
 0x3a3   :  { %703 = vsyncpa [#allocation8], 1 }
 0x3a4   :  { %704 = vsyncpa [#allocation11], 1 }
 0x3a5   :  { %705 = vsyncpa [#allocation9], 1 }

// kernel: tpu_custom_call.1
= control target key start
LH: loop header
LB: loop body
LE: loop exit
PB: predicated region body
PF: predicated region fallthrough
CT: control target
= control target key end

     0   :  { %7 = vsyncpa [#allocation8], 0  ;;  %s982_s0 = inlined_call_operand.hbm [shape: f32[8,32], index: 0, kind: input, shape index: {}]   ;;  %s983_s1 = inlined_call_operand.hbm [shape: f32[8,32], index: 1, kind: input, shape index: {}]   ;;  %s984_s2 = inlined_call_operand.hbm [shape: f32[1,1], index: 2, kind: output, shape index: {}]  }
   0x1   :  { %8 = vsyncpa [#allocation11], 0 }
   0x2   :  { %9 = vsyncpa [#allocation9], 0  ;;  %s864_s9 = smov [#allocation7]   ;;  %s865_s11 = smov [#allocation10]  }
   0x3   :  { %s16_s10 = sshll.u32 %s864_s9, 4  ;;  %s26_s12 = sshll.u32 %s865_s11, 4  ;;  %s17_s10 = int_to_ptr.vmem [resolvable:$true] %s16_s10  ;;  %s27_s12 = int_to_ptr.vmem [resolvable:$true] %s26_s12 }
   0x4   :  { %s792_s15 = scalar_lea.hbm %s982_s0, 128 }
   0x5   :  { %p793_p0 = scmp.ne.s32.totalorder %s982_s0, %s792_s15  ;;  %p796_p1 = scmp.lt.u32.totalorder %s792_s15, %s982_s0 }
   0x7   :  { %p798_p2 = pnand %p796_p1, %p793_p0 }
   0x9   :  { %801 = shalt.err (!%p798_p2)
}
   0xa   :  { %s802_s20 = scalar_lea.vmem %s17_s10, 128  ;;  %p807_p4 = scmp.lt.s32.totalorder %s17_s10, %s17_s10 }
   0xb   :  { %p803_p3 = scmp.ne.s32.totalorder %s17_s10, %s802_s20  ;;  %p808_p5 = scmp.lt.s32.totalorder %s802_s20, %s802_s20 }
   0xd   :  { %p809_p6 = por %p808_p5, %p807_p4 }
   0xf   :  { %p810_p7 = pnand %p809_p6, %p803_p3 }
  0x11   :  { %813 = shalt.err (!%p810_p7)
}
  0x12   :  { %19 = dma.hbm_to_vmem [thread:$0]  %s982_s0, 128, %s17_s10, [#allocation8]  }
  0x13   :  { %s814_s25 = scalar_lea.hbm %s983_s1, 128 }
  0x14   :  { %p815_p8 = scmp.ne.s32.totalorder %s983_s1, %s814_s25  ;;  %p818_p9 = scmp.lt.u32.totalorder %s814_s25, %s983_s1 }
  0x16   :  { %p820_p10 = pnand %p818_p9, %p815_p8 }
  0x18   :  { %823 = shalt.err (!%p820_p10)
}
  0x19   :  { %s824_s30 = scalar_lea.vmem %s27_s12, 128  ;;  %p829_p12 = scmp.lt.s32.totalorder %s27_s12, %s27_s12 }
  0x1a   :  { %p825_p11 = scmp.ne.s32.totalorder %s27_s12, %s824_s30  ;;  %p830_p13 = scmp.lt.s32.totalorder %s824_s30, %s824_s30 }
  0x1c   :  { %p831_p0 = por %p830_p13, %p829_p12 }
  0x1e   :  { %p832_p1 = pnand %p831_p0, %p825_p11 }
  0x20   :  { %835 = shalt.err (!%p832_p1)
}
  0x21   :  { %29 = dma.hbm_to_vmem [thread:$0]  %s983_s1, 128, %s27_s12, [#allocation11]  }
  0x22   :  { %858 = dma.done.wait [#allocation8], 128  }
  0x23   :  { %859 = vsyncadd [#allocation8], 4294967168 }
  0x24   :  { %860 = dma.done.wait [#allocation11], 128  }
  0x25   :  { %861 = vsyncadd [#allocation11], 4294967168  ;;  %v866_v0 = vmov 0.0   ;;  %vm867_vm0 = vmmov 0   ;;  %vm53_vm1 = vcmask 261120   ;;  %v916_v1 = vld [vmem:[#allocation10] sm:$0xff]  ;;  %v567_v35 = vlaneseq }
  0x26   :  { %733 = vmatprep.subr.mxu0 %v866_v0  ;;  %718 = vmatprep.subr.mxu1 %v866_v0  ;;  %v918_v2 = vld [vmem:[#allocation7] sm:$0xff]  ;;  %v58_v3 = vsel %vm53_vm1, %v916_v1, 0  ;;  %vm507_vm2 = vcmask 64512   ;;  %v538_v23 = vmul.f32 %v916_v1, %v916_v1  ;;  %vm42_vm3 = vcmask 0   ;;  %s870_s16 = smov [#allocation12]  }
  0x27   :  { %735 = vmatprep.mubr.msk.f32.mxu0 %vm867_vm0, %v866_v0  ;;  %720 = vmatprep.mubr.msk.f32.mxu1 %vm867_vm0, %v866_v0  ;;  %v51_v4 = vmul.f32 5.0, %v918_v2  ;;  %v61_v5 = vand.u32 4294901760, %v58_v3  ;;  %v527_v22 = vmul.f32 %v918_v2, %v918_v2  ;;  %v868_v24 = vmov -inf   ;;  %s696_s17 = sshll.u32 %s870_s16, 4  ;;  %s697_s17 = int_to_ptr.vmem [resolvable:$true] %s696_s17 }
  0x28   :  { %43 = vst.msk [vmem:[#allocation3] sm:$0x1] %vm42_vm3, %v868_v24  ;;  %v539_v26 = vsel %vm53_vm1, %v538_v23, 0.0  ;;  %v869_v27 = vmov 0   ;;  %vm40_vm4 = vcmask 57344   ;;  %v568_v36 = vshrl.u32 %v567_v35, 7  ;;  %p841_p3 = scmp.lt.s32.totalorder %s697_s17, %s697_s17 }
  0x29   :  { %v55_v6 = vsel %vm53_vm1, %v51_v4, 0  ;;  %v138_v7 = vsub.f32 %v58_v3, %v61_v5  ;;  %734 = vmatpush3.xpose.msra.mxu0 %v61_v5  ;;  %719 = vmatpush3.xpose.msra.mxu1 %v61_v5  ;;  %v528_v25 = vsel %vm53_vm1, %v527_v22, 0.0  ;;  %41 = vst.msk [vmem:[#allocation2] sm:$0x1] %vm40_vm4, %v866_v0  ;;  %v522_v50 = vmul.f32 %v916_v1, %v918_v2  ;;  %s836_s21 = scalar_lea.vmem %s697_s17, 16  ;;  %s840_s22 = scalar_lea.vmem %s697_s17, 32 }
  0x2a   :  { %v126_v8 = vand.u32 4294901760, %v55_v6  ;;  %723 = vmatprep.subr.mxu1 %v866_v0  ;;  %738 = vmatprep.subr.mxu0 %v866_v0  ;;  %v950_v38 = vsub.s32 0, %v568_v36  ;;  %vm605_vm9 = vcmask 7168   ;;  %p837_p2 = scmp.ne.s32.totalorder %s697_s17, %s836_s21  ;;  %p842_p4 = scmp.lt.s32.totalorder %s840_s22, %s836_s21 }
  0x2b   :  { %v139_v10 = vand.u32 4294901760, %v138_v7  ;;  %529 = vadd.xlane.f32.xlu1 %v528_v25  ;;  %775 = vset.pattern.permute.xlu0 %v869_v27  ;;  %v523_v51 = vsel %vm53_vm1, %v522_v50, 0.0 }
  0x2c   :  { %v127_v9 = vsub.f32 %v55_v6, %v126_v8  ;;  %774 = vset.pattern.permute.xlu1 %v869_v27  ;;  %p843_p5 = por %p842_p4, %p841_p3 }
  0x2d   :  { %v140_v12 = vsub.f32 %v138_v7, %v139_v10 }
  0x2e   :  { %v128_v11 = vand.u32 4294901760, %v127_v9  ;;  %p844_p6 = pnand %p843_p5, %p837_p2 }
  0x2f   :  { %v141_v14 = vand.u32 4294901760, %v140_v12  ;;  %540 = vadd.xlane.f32.xlu1 %v539_v26  ;;  %v560_v37 = vld [vmem:[#allocation3] sm:$0x1] }
  0x30   :  { %736 = vmatmul.mubr.f32.vlgmr.msra.gmra.mrb[0].mxu0 %v128_v11  ;;  %v129_v13 = vsub.f32 %v127_v9, %v128_v11  ;;  %v575_v2 = vld [vmem:[#allocation2] sm:$0x1] }
  0x31   :  { %739 = vmatpush3.xpose.msra.mxu0 %v139_v10  ;;  %740 = vmatprep.mubr.msk.f32.mxu0 %vm867_vm0, %v866_v0 }
  0x32   :  { %v130_v15 = vand.u32 4294901760, %v129_v13  ;;  %743 = vmatprep.subr.mxu0 %v866_v0 }
  0x34   :  { %721 = vmatmul.mubr.f32.vlgmr.msra.gmra.mrb[0].mxu1 %v130_v15 }
  0x35   :  { %724 = vmatpush3.xpose.msra.mxu1 %v141_v14  ;;  %725 = vmatprep.mubr.msk.f32.mxu1 %vm867_vm0, %v866_v0 }
  0x36   :  { %728 = vmatprep.subr.mxu1 %v866_v0 }
  0x38   :  { %741 = vmatmul.mubr.f32.vlgmr.msra.gmra.mrb[0].mxu0 %v126_v8 }
  0x39   :  { %744 = vmatpush3.xpose.msra.mxu0 %v61_v5  ;;  %745 = vmatprep.mubr.msk.f32.mxu0 %vm867_vm0, %v866_v0 }
  0x3c   :  { %726 = vmatmul.mubr.f32.vlgmr.msra.gmra.mrb[0].mxu1 %v126_v8 }
  0x3d   :  { %729 = vmatpush3.xpose.msra.mxu1 %v138_v7  ;;  %730 = vmatprep.mubr.msk.f32.mxu1 %vm867_vm0, %v866_v0 }
  0x40   :  { %746 = vmatmul.mubr.f32.vlgmr.msra.gmra.mrb[0].mxu0 %v126_v8 }
  0x44   :  { %731 = vmatmul.mubr.f32.vlgmr.msra.gmra.mrb[0].mxu1 %v127_v9 }
  0xb8   :  { %v530_v55 = vpop.xlane.xlu1 %529 }
  0xb9   :  { %vm533_vm5 = vcmp.eq.f32.partialorder %v530_v55, inf  ;;  %v536_v11 = vand.u32 2147483648, %v530_v55  ;;  %vm535_vm7 = vcmp.eq.f32.partialorder %v530_v55, 0.0 }
  0xbc   :  { %v541_v57 = vpop.xlane.xlu1 %540 }
  0xbd   :  { %vm544_vm6 = vcmp.eq.f32.partialorder %v541_v57, inf  ;;  %v547_v12 = vand.u32 2147483648, %v541_v57  ;;  %vm546_vm8 = vcmp.eq.f32.partialorder %v541_v57, 0.0 }
 0x113   :  { %v502_v16 = vpop.f32.mrb[0].mxu0 }
 0x114   :  { %v747_v17 = vpop.f32.mrb[1].mxu0 }
 0x117   :  { %v282_v18 = vpop.f32.mrb[0].mxu1 }
 0x118   :  { %v748_v19 = vadd.f32 %v502_v16, %v282_v18  ;;  %v732_v20 = vpop.f32.mrb[1].mxu1 }
 0x11a   :  { %v508_v21 = vsel %vm507_vm2, %v748_v19, -inf }
 0x11b   :  { %509 = vmax.xlane.f32.xlu0 %v508_v21 }
 0x1a8   :  { %v944_v28 = vpop.xlane.xlu0 %509 }
 0x1a9   :  { %v553_v29 = vrot.slane %v944_v28, 4  ;;  %v511_v48 = vsub.f32 %v748_v19, %v944_v28 }
 0x1ab   :  { %v554_v30 = vmax.f32 %v944_v28, %v553_v29  ;;  %v512_v49 = vmul.f32 1.442695, %v511_v48 }
 0x1ad   :  { %v555_v31 = vrot.slane %v554_v30, 2 }
 0x1af   :  { %v556_v32 = vmax.f32 %v554_v30, %v555_v31 }
 0x1b1   :  { %v557_v33 = vrot.slane %v556_v32, 1 }
 0x1b3   :  { %v558_v34 = vmax.f32 %v556_v32, %v557_v33 }
 0x1b5   :  { %757 = vpush %v558_v34 }
 0x1e6   :  { %s758_s1 = spop %757 }
 0x1e7   :  { %v561_v39 = vstv %s758_s1 }
 0x1e8   :  { %v562_v40 = vmax.f32 %v560_v37, %v561_v39 }
 0x1ea   :  { %v563_v41 = vsub.f32 %v560_v37, %v562_v40  ;;  %v570_v42 = vrot.slane %v562_v40, %v950_v38  ;;  %603 = vst.msk [vmem:[#allocation3] sm:$0x1] %vm42_vm3, %v562_v40 }
 0x1ec   :  { %v564_v43 = vmul.f32 1.442695, %v563_v41  ;;  %v572_v44 = vsub.f32 %v944_v28, %v570_v42 }
 0x1ee   :  { %776 = vpow2.f32 %v564_v43  ;;  %v573_v45 = vmul.f32 1.442695, %v572_v44 }
 0x1f0   :  { %778 = vpow2.f32 %v573_v45 }
 0x1f1   :  { %780 = vpow2.f32 %v512_v49  ;;  %v653_v54 = vld [vmem:[#allocation3] sm:$0x1] }
 0x1f2   :  { %782 = vrsqrt.f32 %v530_v55 }
 0x1f3   :  { %784 = vrsqrt.f32 %v541_v57 }
 0x1f8   :  { %v777_v46 = vpop.eup %776 }
 0x1f9   :  { %578 = vperm.xlu1 %774, %v777_v46  }
 0x1fa   :  { %v779_v47 = vpop.eup %778 }
 0x1fb   :  { %588 = vperm.xlu0 %775, %v779_v47   ;;  %v781_v52 = vpop.eup %780 }
 0x1fc   :  { %v514_v53 = vsel %vm507_vm2, %v781_v52, 0.0  ;;  %v783_v4 = vpop.eup %782 }
 0x1fd   :  { %v785_v5 = vpop.eup %784  ;;  %v532_v9 = vmul.f32 %v783_v4, %v530_v55 }
 0x1fe   :  { %v543_v10 = vmul.f32 %v785_v5, %v541_v57 }
 0x1ff   :  { %v534_v13 = vsel %vm533_vm5, %v530_v55, %v532_v9 }
 0x200   :  { %v545_v14 = vsel %vm544_vm6, %v541_v57, %v543_v10  ;;  %v537_v15 = vsel %vm535_vm7, %v536_v11, %v534_v13 }
 0x201   :  { %v548_v16 = vsel %vm546_vm8, %v547_v12, %v545_v14 }
 0x202   :  { %v549_v17 = vmul.f32 %v548_v16, %v537_v15 }
 0x204   :  { %v550_v18 = vmax.f32 %v549_v17, 1e-06 }
 0x206   :  { %786 = vrcp.f32 %v550_v18 }
 0x210   :  { %v787_v19 = vpop.eup %786 }
 0x21a   :  { %524 = vadd.xlane.f32.xlu0 %v523_v51 }
 0x21d   :  { %515 = vadd.xlane.f32.xlu1 %v514_v53 }
 0x22e   :  { %656 = vperm.xlu1 %774, %v653_v54  }
 0x278   :  { %v579_v62 = vpop.permute.xlu1 %578 }
 0x279   :  { %v584_v0 = vrot.slane %v579_v62, %v950_v38 }
 0x27a   :  { %v589_v56 = vpop.permute.xlu0 %588 }
 0x27b   :  { %v591_v58 = vmul.f32 %v781_v52, %v589_v56  ;;  %v585_v6 = vmul.f32 %v584_v0, %v575_v2 }
 0x27d   :  { %v592_v59 = vsel %vm507_vm2, %v591_v58, 0.0 }
 0x27e   :  { %v593_v60 = vrot.slane %v592_v59, 4 }
 0x280   :  { %v594_v61 = vadd.f32 %v593_v60, %v592_v59 }
 0x282   :  { %v595_v63 = vrot.slane %v594_v61, 2 }
 0x284   :  { %v596_v1 = vadd.f32 %v595_v63, %v594_v61 }
 0x286   :  { %v597_v3 = vrot.slane %v596_v1, 1 }
 0x288   :  { %v598_v7 = vadd.f32 %v597_v3, %v596_v1 }
 0x28a   :  { %v599_v8 = vadd.f32 %v598_v7, %v585_v6 }
 0x28c   :  { %601 = vst.msk [vmem:[#allocation2] sm:$0x1] %vm40_vm4, %v599_v8 }
 0x293   :  { %v650_v21 = vld [vmem:[#allocation2] sm:$0x1] }
 0x294   :  { %788 = vlog2.f32 %v650_v21 }
 0x29e   :  { %v789_v29 = vpop.eup %788 }
 0x29f   :  { %v652_v34 = vmul.f32 0.6931472, %v789_v29 }
 0x2a7   :  { %v525_v20 = vpop.xlane.xlu0 %524 }
 0x2a8   :  { %v526_v22 = vmul.f32 5.0, %v525_v20  ;;  %v552_v23 = vmul.f32 %v787_v19, %v525_v20 }
 0x2aa   :  { %v516_v24 = vpop.xlane.xlu1 %515  ;;  %v634_v25 = vsel %vm605_vm9, %v552_v23, 0.0  ;;  %v606_v26 = vsel %vm605_vm9, %v526_v22, 0.0 }
 0x2ab   :  { %790 = vlog2.f32 %v516_v24  ;;  %635 = vadd.xlane.f32.xlu0 %v634_v25  ;;  %607 = vadd.xlane.f32.xlu1 %v606_v26 }
 0x2ae   :  { %v657_v27 = vpop.permute.xlu1 %656 }
 0x2af   :  { %v662_v32 = vrot.slane %v657_v27, %v950_v38 }
 0x2b1   :  { %v663_v36 = vadd.f32 %v662_v32, %v652_v34 }
 0x2b3   :  { %v664_v37 = vsel %vm40_vm4, %v663_v36, 0.0 }
 0x2b5   :  { %v791_v30 = vpop.eup %790 }
 0x2b6   :  { %v518_v31 = vmul.f32 0.6931472, %v791_v30 }
 0x2b8   :  { %v519_v33 = vadd.f32 %v518_v31, %v944_v28 }
 0x2ba   :  { %v620_v35 = vsel %vm605_vm9, %v519_v33, 0.0 }
 0x2bb   :  { %621 = vadd.xlane.f32.xlu0 %v620_v35 }
 0x2bf   :  { %665 = vadd.xlane.f32.xlu0 %v664_v37 }
 0x338   :  { %v608_v39 = vpop.xlane.xlu1 %607  ;;  %v636_v42 = vpop.xlane.xlu0 %635 }
 0x339   :  { %v609_v40 = vrot.slane %v608_v39, 4  ;;  %v637_v45 = vrot.slane %v636_v42, 4 }
 0x33b   :  { %v610_v41 = vadd.f32 %v609_v40, %v608_v39  ;;  %v638_v38 = vadd.f32 %v637_v45, %v636_v42 }
 0x33d   :  { %v611_v43 = vrot.slane %v610_v41, 2  ;;  %v639_v28 = vrot.slane %v638_v38, 2 }
 0x33f   :  { %v612_v44 = vadd.f32 %v611_v43, %v610_v41  ;;  %v640_v52 = vadd.f32 %v639_v28, %v638_v38 }
 0x341   :  { %v613_v46 = vrot.slane %v612_v44, 1  ;;  %v641_v57 = vrot.slane %v640_v52, 1 }
 0x343   :  { %v614_v47 = vadd.f32 %v613_v46, %v612_v44  ;;  %v642_v62 = vadd.f32 %v641_v57, %v640_v52 }
 0x345   :  { %759 = vpush %v614_v47 }
 0x348   :  { %v622_v48 = vpop.xlane.xlu0 %621 }
 0x349   :  { %v623_v49 = vrot.slane %v622_v48, 4 }
 0x34b   :  { %v624_v50 = vadd.f32 %v623_v49, %v622_v48 }
 0x34c   :  { %v666_v51 = vpop.xlane.xlu0 %665 }
 0x34d   :  { %v625_v53 = vrot.slane %v624_v50, 2  ;;  %v667_v54 = vrot.slane %v666_v51, 4 }
 0x34f   :  { %v668_v55 = vadd.f32 %v667_v54, %v666_v51  ;;  %v626_v56 = vadd.f32 %v625_v53, %v624_v50 }
 0x351   :  { %v669_v58 = vrot.slane %v668_v55, 2  ;;  %v627_v59 = vrot.slane %v626_v56, 1 }
 0x353   :  { %v670_v60 = vadd.f32 %v669_v58, %v668_v55  ;;  %v628_v61 = vadd.f32 %v627_v59, %v626_v56 }
 0x355   :  { %761 = vpush %v628_v61  ;;  %v671_v63 = vrot.slane %v670_v60, 1 }
 0x356   :  { %763 = vpush %v642_v62 }
 0x357   :  { %v672_v0 = vadd.f32 %v671_v63, %v670_v60 }
 0x359   :  { %765 = vpush %v672_v0 }
 0x376   :  { %s760_s4 = spop %759 }
 0x386   :  { %s762_s5 = spop %761 }
 0x387   :  { %s676_s6 = ssub.f32 %s760_s4, %s762_s5  ;;  %s764_s7 = spop %763 }
 0x388   :  { %s685_s11 = smul.f32 0.125, %s764_s7 }
 0x389   :  { %s677_s8 = ssub.f32 0.0, %s676_s6 }
 0x38a   :  { %s766_s9 = spop %765  ;;  %s686_s18 = ssub.f32 1.0, %s685_s11 }
 0x38b   :  { %s679_s10 = ssub.f32 %s760_s4, %s766_s9  ;;  %s678_s13 = smul.f32 0.125, %s677_s8 }
 0x38d   :  { %s680_s12 = ssub.f32 0.0, %s679_s10 }
 0x38f   :  { %s681_s14 = smul.f32 0.125, %s680_s12 }
 0x391   :  { %s682_s15 = sadd.f32 %s681_s14, %s678_s13 }
 0x393   :  { %s683_s19 = smul.f32 0.5, %s682_s15 }
 0x395   :  { %s687_s20 = sadd.f32 %s686_s18, %s683_s19 }
 0x397   :  { %v688_v1 = vstv %s687_s20 }
 0x398   :  { %689 = vst.msk [vmem:[#allocation12] sm:$0x1] %vm42_vm3, %v688_v1 }
 0x399   :  { %847 = shalt.err (!%p844_p6)
}
 0x39a   :  { %s848_s25 = scalar_lea.hbm %s984_s2, 16 }
 0x39b   :  { %p849_p7 = scmp.ne.s32.totalorder %s984_s2, %s848_s25  ;;  %p852_p8 = scmp.lt.u32.totalorder %s848_s25, %s984_s2 }
 0x39d   :  { %p854_p9 = pnand %p852_p8, %p849_p7 }
 0x39f   :  { %857 = shalt.err (!%p854_p9)
}
 0x3a0   :  { %699 = dma.vmem_to_hbm [thread:$0]  %s697_s17, 16, %s984_s2, [#allocation9]  }
 0x3a1   :  { %862 = dma.done.wait [#allocation9], 16  }
 0x3a2   :  { %863 = vsyncadd [#allocation9], 4294967280 }
 0x3a3   :  { %703 = vsyncpa [#allocation8], 1 }
 0x3a4   :  { %704 = vsyncpa [#allocation11], 1 }
 0x3a5   :  { %705 = vsyncpa [#allocation9], 1 }

</bundles_post_ra>
